<compile_context>
chip_gen: v5e
topology: v5e:2x2
jax: 0.10.0
libtpu: 0.0.40
codegen_flags: <defaults>
</compile_context>

<pallas_src>
import functools

import jax
import jax.numpy as jnp
from jax import lax
from jax.experimental import pallas as pl
from jax.experimental.pallas import tpu as pltpu

LANES = 128
SUBLANES = 8
MIN_KERNEL_ROWS = SUBLANES            # below this, pure-JAX fallback (tiny input)

# Diff ('mse'/'l1') kernel tiling: 64-row (8 vreg / stream) inner steps,
# 4096-row blocks = 2 MiB f32 per input per pipeline buffer.
DIFF_SUB_ROWS = 64
DIFF_MAX_BLOCK_ROWS = 4096
DIFF_UNROLL = 8

# Obj ('l1_and_obj') kernel tiling: 32-row inner steps (more live temps per
# stream), 2048-row blocks = 1 MiB f32 per input per pipeline buffer.
OBJ_SUB_ROWS = 32
OBJ_MAX_BLOCK_ROWS = 2048
OBJ_UNROLL = 4

VMEM_LIMIT_BYTES = 32 * 1024 * 1024   # headroom above v5e's 16 MiB scoped default


# --------------------------------------------------------------------------- #
# Chip / tiling helpers
# --------------------------------------------------------------------------- #
def _default_core_splits():
    """2-way leading 'parallel' axis only on multi-TensorCore chips."""
    # TODO(synk): confirm with an xprof trace that "parallel" really shards the
    # leading axis across v7x's two TCs; switch to pltpu.CORE_PARALLEL /
    # pl.core_map over create_tensorcore_mesh if it does not.
    try:
        kind = jax.devices()[0].device_kind.lower()
    except Exception:
        return 2
    # Single-TC chips (v5e / v6e): the split would only add a phantom grid step.
    if "lite" in kind or "v5e" in kind or "v6e" in kind:
        return 1
    return 2


def _tiling(rows, max_block_rows, sub_rows, unroll, core_splits):
    """Pick (block_rows, sub_rows, subs_per_block, unroll, nb, splits, nbpc)."""
    # sub_rows: multiple of 8 and <= rows (caller guarantees rows >= 8).
    sub_rows = min(sub_rows, (rows // SUBLANES) * SUBLANES)
    max_subs = max(1, max_block_rows // sub_rows)
    subs = max(1, min(max_subs, rows // sub_rows))        # block_rows <= rows
    if subs >= unroll:
        subs = (subs // unroll) * unroll                  # unroll divides trip count
    else:
        unroll = subs                                     # fully unroll short loops
    block_rows = subs * sub_rows
    nb = pl.cdiv(rows, block_rows)
    splits = max(1, min(core_splits, nb))
    nbpc = pl.cdiv(nb, splits)
    return block_rows, sub_rows, subs, unroll, nb, splits, nbpc


def _flatten_split(x):
    """Flatten row-major; return (main_2d_or_None, tail_1d, rows).

    `main` is a zero-copy (rows, 128) view when x.size % 128 == 0; the <128
    element remainder is returned as `tail` and summed in plain JAX.
    """
    flat = x.reshape(-1)
    n = flat.shape[0]
    rows = n // LANES
    if rows < MIN_KERNEL_ROWS:
        return None, flat, 0
    main_elems = rows * LANES
    if main_elems == n:
        return flat.reshape(rows, LANES), flat[:0], rows
    # TODO(synk): for numel not a multiple of 128 this prefix slice still costs
    # one copy (strictly smaller than the old full-array pad); fully copy-free
    # would need a raw 1-D HBM ref + manual DMA, not worth it here.
    return flat[:main_elems].reshape(rows, LANES), flat[main_elems:], rows


# --------------------------------------------------------------------------- #
# Kernels
# --------------------------------------------------------------------------- #
def _diff_sums_kernel(p_ref, t_ref, sq_ref, ab_ref, *,
                      rows_total, nbpc, block_rows, sub_rows, n_sub, unroll):
    """Partial sums of (p-t)^2 and |p-t| into per-core (1,8,128) accumulators."""
    c = pl.program_id(0)
    i = pl.program_id(1)

    @pl.when(i == 0)
    def _():
        sq_ref[...] = jnp.zeros_like(sq_ref)
        ab_ref[...] = jnp.zeros_like(ab_ref)

    # Valid rows of this grid step (rows_total is a static shape constant).
    # Handles both the partial last block and the at-most-one phantom step the
    # clamped index_map re-reads (valid == 0 there).
    start = (c * nbpc + i) * block_rows
    valid = jnp.clip(rows_total - start, 0, block_rows)
    row_iota = lax.broadcasted_iota(jnp.int32, (sub_rows, LANES), 0)   # hoisted
    groups = sub_rows // SUBLANES

    def body(j, carry):
        sq, ab = carry
        off = pl.multiple_of(j * sub_rows, SUBLANES)
        p = p_ref[pl.ds(off, sub_rows), :].astype(jnp.float32)
        t = t_ref[pl.ds(off, sub_rows), :].astype(jnp.float32)
        d = jnp.where(row_iota < valid - off, p - t, 0.0)
        sq = sq + jnp.sum((d * d).reshape(groups, SUBLANES, LANES), axis=0)
        ab = ab + jnp.sum(jnp.abs(d).reshape(groups, SUBLANES, LANES), axis=0)
        return sq, ab

    zero = jnp.zeros((SUBLANES, LANES), jnp.float32)
    sq, ab = lax.fori_loop(0, n_sub, body, (zero, zero), unroll=unroll)
    sq_ref[0] += sq
    ab_ref[0] += ab


def _obj_sums_kernel(p_ref, t_ref, m_ref, sq_ref, ms_ref, wb_ref, *,
                     rows_total, nbpc, block_rows, sub_rows, n_sub, unroll,
                     in_mask_w, oom_w, use_weights):
    """Partial sums for 'l1_and_obj':
       sq = sum((p-t)^2), ms = sum(mask), wb = sum(weights * BCE(sigmoid(p), mask)).
    """
    c = pl.program_id(0)
    i = pl.program_id(1)

    @pl.when(i == 0)
    def _():
        sq_ref[...] = jnp.zeros_like(sq_ref)
        ms_ref[...] = jnp.zeros_like(ms_ref)
        wb_ref[...] = jnp.zeros_like(wb_ref)

    start = (c * nbpc + i) * block_rows
    valid = jnp.clip(rows_total - start, 0, block_rows)
    row_iota = lax.broadcasted_iota(jnp.int32, (sub_rows, LANES), 0)   # hoisted
    groups = sub_rows // SUBLANES

    def body(j, carry):
        sq, ms, wb = carry
        off = pl.multiple_of(j * sub_rows, SUBLANES)
        keep = row_iota < valid - off
        p = p_ref[pl.ds(off, sub_rows), :].astype(jnp.float32)
        t = t_ref[pl.ds(off, sub_rows), :].astype(jnp.float32)
        m = m_ref[pl.ds(off, sub_rows), :].astype(jnp.float32)
        d = jnp.where(keep, p - t, 0.0)
        mk = jnp.where(keep, m, 0.0)
        # BCE(sigmoid(p), m) in numerically-stable with-logits form (exp/log1p
        # run on the EUP, a separate bundle slot).
        # TODO(synk): if xprof shows the EUP binding on v7x, compute the
        # softplus term in bf16 and accumulate in f32.
        bce = jnp.maximum(p, 0.0) - p * m + jnp.log1p(jnp.exp(-jnp.abs(p)))
        if use_weights:
            # Matches torch's exact-equality weight select (soft mask values
            # fall back to weight 1.0).  Strictly-binary masks could instead
            # use oom_w + (in_mask_w - oom_w) * m to save 2 cmp + 2 sel / elem.
            bce = bce * jnp.where(m == 1.0, in_mask_w,
                                  jnp.where(m == 0.0, oom_w, 1.0))
        wbce = jnp.where(keep, bce, 0.0)
        sq = sq + jnp.sum((d * d).reshape(groups, SUBLANES, LANES), axis=0)
        ms = ms + jnp.sum(mk.reshape(groups, SUBLANES, LANES), axis=0)
        wb = wb + jnp.sum(wbce.reshape(groups, SUBLANES, LANES), axis=0)
        return sq, ms, wb

    zero = jnp.zeros((SUBLANES, LANES), jnp.float32)
    sq, ms, wb = lax.fori_loop(0, n_sub, body, (zero, zero, zero), unroll=unroll)
    sq_ref[0] += sq
    ms_ref[0] += ms
    wb_ref[0] += wb


# --------------------------------------------------------------------------- #
# Plain-JAX partial sums (tails / tiny inputs)
# --------------------------------------------------------------------------- #
def _diff_partial_sums_jnp(p, t):
    d = p.astype(jnp.float32) - t.astype(jnp.float32)
    return jnp.sum(d * d), jnp.sum(jnp.abs(d))


def _obj_partial_sums_jnp(p, t, m, in_mask_w, oom_w, use_weights):
    p = p.astype(jnp.float32)
    t = t.astype(jnp.float32)
    m = m.astype(jnp.float32)
    d = p - t
    bce = jnp.maximum(p, 0.0) - p * m + jnp.log1p(jnp.exp(-jnp.abs(p)))
    if use_weights:
        bce = bce * jnp.where(m == 1.0, in_mask_w, jnp.where(m == 0.0, oom_w, 1.0))
    return jnp.sum(d * d), jnp.sum(m), jnp.sum(bce)


# --------------------------------------------------------------------------- #
# Wrappers
# --------------------------------------------------------------------------- #
def _run_diff_sums(pred, target):
    p_main, p_tail, rows = _flatten_split(pred)
    t_main, t_tail, _ = _flatten_split(target)

    if p_main is None:                            # tiny input: no kernel needed
        return _diff_partial_sums_jnp(p_tail, t_tail)

    (block_rows, sub_rows, n_sub, unroll, nb, splits, nbpc) = _tiling(
        rows, DIFF_MAX_BLOCK_ROWS, DIFF_SUB_ROWS, DIFF_UNROLL,
        _default_core_splits())

    kernel = functools.partial(
        _diff_sums_kernel, rows_total=rows, nbpc=nbpc, block_rows=block_rows,
        sub_rows=sub_rows, n_sub=n_sub, unroll=unroll)

    in_map = lambda c, i: (jnp.minimum(c * nbpc + i, nb - 1), 0)
    out_map = lambda c, i: (c, 0, 0)
    acc_shape = jax.ShapeDtypeStruct((splits, SUBLANES, LANES), jnp.float32)
    n_main = rows * LANES
    cost = pl.CostEstimate(
        flops=6 * n_main, transcendentals=0,
        bytes_accessed=n_main * (pred.dtype.itemsize + target.dtype.itemsize))

    sq, ab = pl.pallas_call(
        kernel,
        out_shape=(acc_shape, acc_shape),
        grid_spec=pltpu.PrefetchScalarGridSpec(
            num_scalar_prefetch=0,
            grid=(splits, nbpc),
            in_specs=[pl.BlockSpec((block_rows, LANES), in_map),
                      pl.BlockSpec((block_rows, LANES), in_map)],
            out_specs=[pl.BlockSpec((1, SUBLANES, LANES), out_map),
                       pl.BlockSpec((1, SUBLANES, LANES), out_map)],
        ),
        compiler_params=pltpu.CompilerParams(
            dimension_semantics=("parallel", "arbitrary"),
            vmem_limit_bytes=VMEM_LIMIT_BYTES),
        cost_estimate=cost,
    )(p_main, t_main)

    sse = jnp.sum(sq)
    sae = jnp.sum(ab)
    if p_tail.shape[0]:
        tsq, tab = _diff_partial_sums_jnp(p_tail, t_tail)
        sse = sse + tsq
        sae = sae + tab
    return sse, sae


def _run_obj_sums(pred, target, mask, in_mask_w, oom_w):
    in_mask_w = float(in_mask_w)
    oom_w = float(oom_w)
    use_weights = not (in_mask_w == 1.0 and oom_w == 1.0)

    p_main, p_tail, rows = _flatten_split(pred)
    t_main, t_tail, _ = _flatten_split(target)
    m_main, m_tail, _ = _flatten_split(mask)

    if p_main is None:                            # tiny input: no kernel needed
        return _obj_partial_sums_jnp(p_tail, t_tail, m_tail,
                                     in_mask_w, oom_w, use_weights)

    (block_rows, sub_rows, n_sub, unroll, nb, splits, nbpc) = _tiling(
        rows, OBJ_MAX_BLOCK_ROWS, OBJ_SUB_ROWS, OBJ_UNROLL,
        _default_core_splits())

    kernel = functools.partial(
        _obj_sums_kernel, rows_total=rows, nbpc=nbpc, block_rows=block_rows,
        sub_rows=sub_rows, n_sub=n_sub, unroll=unroll,
        in_mask_w=in_mask_w, oom_w=oom_w, use_weights=use_weights)

    in_map = lambda c, i: (jnp.minimum(c * nbpc + i, nb - 1), 0)
    out_map = lambda c, i: (c, 0, 0)
    acc_shape = jax.ShapeDtypeStruct((splits, SUBLANES, LANES), jnp.float32)
    n_main = rows * LANES
    cost = pl.CostEstimate(
        flops=16 * n_main, transcendentals=2 * n_main,
        bytes_accessed=n_main * (pred.dtype.itemsize + target.dtype.itemsize
                                 + mask.dtype.itemsize))

    sq, ms, wb = pl.pallas_call(
        kernel,
        out_shape=(acc_shape, acc_shape, acc_shape),
        grid_spec=pltpu.PrefetchScalarGridSpec(
            num_scalar_prefetch=0,
            grid=(splits, nbpc),
            in_specs=[pl.BlockSpec((block_rows, LANES), in_map)] * 3,
            out_specs=[pl.BlockSpec((1, SUBLANES, LANES), out_map)] * 3,
        ),
        compiler_params=pltpu.CompilerParams(
            dimension_semantics=("parallel", "arbitrary"),
            vmem_limit_bytes=VMEM_LIMIT_BYTES),
        cost_estimate=cost,
    )(p_main, t_main, m_main)

    sse, msum, wbce = jnp.sum(sq), jnp.sum(ms), jnp.sum(wb)
    if p_tail.shape[0]:
        tsq, tms, twb = _obj_partial_sums_jnp(p_tail, t_tail, m_tail,
                                              in_mask_w, oom_w, use_weights)
        sse, msum, wbce = sse + tsq, msum + tms, wbce + twb
    return sse, msum, wbce


# --------------------------------------------------------------------------- #
# Module
# --------------------------------------------------------------------------- #
class DenoiserLoss:
    """JAX/Pallas re-implementation of losses.DenoiserLoss forward pass."""

    def __init__(self, loss_type='mse', loss_lambda=0.5, in_mask_weight=1.0,
                 oom_weight=1.0, perc_weight=(100.0, 1.6, 2.3, 1.8, 2.8, 100.0)):
        self.loss_type = loss_type
        self.loss_lambda = loss_lambda
        self.in_mask_weight = in_mask_weight
        self.oom_weight = oom_weight
        self.perc_weight = perc_weight
        if loss_type in ('perceptual', 'mse_and_focal'):
            # TODO(synk): 'perceptual' needs an external VGG feature network and
            # 'mse_and_focal' needs sigmoid_focal_loss (not defined in the
            # source module); not translated.
            raise NotImplementedError(loss_type)

    def __call__(self, pred, target, mask=None):
        n = float(pred.size)

        if self.loss_type == 'mse':
            sse, _ = _run_diff_sums(pred, target)
            return sse / n                              # F.mse_loss(reduction='mean')
        elif self.loss_type == 'l1':
            _, sae = _run_diff_sums(pred, target)
            return sae                                  # F.l1_loss(reduction='sum')
        elif self.loss_type == 'l1_and_obj':
            if mask is None:
                raise ValueError("loss_type='l1_and_obj' requires a mask")
            # NOTE: torch's _validate_inputs range asserts are host-side,
            # data-dependent checks and are not translated.
            sse, msum, wbce = _run_obj_sums(pred, target, mask,
                                            self.in_mask_weight, self.oom_weight)
            mse_loss = sse / n                          # torch uses mse here
            obj_loss = jnp.where(msum > 0.0, wbce / n, 0.0)
            return mse_loss * self.loss_lambda + obj_loss * (1.0 - self.loss_lambda)
        else:
            raise ValueError(f'Unknown loss type: {self.loss_type}')


if __name__ == "__main__":
    key = jax.random.PRNGKey(0)
    k1, k2, k3 = jax.random.split(key, 3)
    B, C, H, W = 2, 4, 16, 16

    pred = jax.random.normal(k1, (B, C, H, W), dtype=jnp.float32)
    target = jax.random.uniform(k2, (B, C, H, W), dtype=jnp.float32)   # in [0, 1]
    mask = (jax.random.uniform(k3, (B, C, H, W)) > 0.5).astype(jnp.float32)

    # mse (default) -- reduction='mean'
    loss_mse = DenoiserLoss(loss_type='mse')(pred, target)
    ref_mse = jnp.mean((pred - target) ** 2)

    # l1 -- reduction='sum'
    loss_l1 = DenoiserLoss(loss_type='l1')(pred, target)
    ref_l1 = jnp.sum(jnp.abs(pred - target))

    # l1_and_obj, default unit weights (specialized: no weight select in kernel)
    lam = 0.5
    loss_obj = DenoiserLoss(loss_type='l1_and_obj', loss_lambda=lam)(pred, target, mask)
    p_sig = jax.nn.sigmoid(pred)
    bce = -(mask * jnp.log(p_sig) + (1 - mask) * jnp.log(1 - p_sig))
    ref_obj = ref_mse * lam + jnp.mean(bce) * (1 - lam)

    # l1_and_obj with non-trivial weights (exercises the weighted kernel path)
    imw, oow = 0.25, 2.0
    loss_objw = DenoiserLoss(loss_type='l1_and_obj', loss_lambda=lam,
                             in_mask_weight=imw, oom_weight=oow)(pred, target, mask)
    w = jnp.where(mask == 1.0, imw, jnp.where(mask == 0.0, oow, 1.0))
    ref_objw = ref_mse * lam + jnp.mean(w * bce) * (1 - lam)

    jax.block_until_ready((loss_mse, loss_l1, loss_obj, loss_objw))

    assert jnp.allclose(loss_mse, ref_mse, rtol=1e-5, atol=1e-6), (loss_mse, ref_mse)
    assert jnp.allclose(loss_l1, ref_l1, rtol=1e-5, atol=1e-4), (loss_l1, ref_l1)
    assert jnp.allclose(loss_obj, ref_obj, rtol=1e-5, atol=1e-5), (loss_obj, ref_obj)
    assert jnp.allclose(loss_objw, ref_objw, rtol=1e-5, atol=1e-5), (loss_objw, ref_objw)

    print("KERNEL_OK")
</pallas_src>

<mosaic_0001>
module attributes {stable_mosaic.version = 11 : i64} {
  func.func @_diff_sums_kernel(%arg0: i32, %arg1: i32, %arg2: memref<16x128xf32, #tpu.memory_space<vmem>>, %arg3: memref<16x128xf32, #tpu.memory_space<vmem>>, %arg4: memref<1x8x128xf32, #tpu.memory_space<vmem>>, %arg5: memref<1x8x128xf32, #tpu.memory_space<vmem>>) attributes {dimension_semantics = [#tpu.dimension_semantics<parallel>, #tpu.dimension_semantics<arbitrary>], iteration_bounds = array<i64: 1, 1>, scalar_prefetch = 0 : i64, scratch_operands = 0 : i64, tpu.core_type = #tpu.core_type<tc>, window_params = [{transform_indices = @transform_0, window_bounds = array<i64: 16, 128>}, {transform_indices = @transform_1, window_bounds = array<i64: 16, 128>}, {transform_indices = @transform_2, window_bounds = array<i64: 1, 8, 128>}, {transform_indices = @transform_3, window_bounds = array<i64: 1, 8, 128>}]} {
    %c0_i32 = arith.constant 0 : i32
    %0 = arith.cmpi eq, %arg1, %c0_i32 : i32
    %1 = arith.extui %0 : i1 to i32
    %c0_i32_0 = arith.constant 0 : i32
    %2 = arith.cmpi ne, %1, %c0_i32_0 : i32
    scf.if %2 {
      %cst_23 = arith.constant 0.000000e+00 : f32
      %43 = vector.broadcast %cst_23 : f32 to vector<1x8x128xf32>
      %c0_24 = arith.constant 0 : index
      %c0_25 = arith.constant 0 : index
      %c0_26 = arith.constant 0 : index
      %44 = vector.load %arg4[%c0_24, %c0_25, %c0_26] : memref<1x8x128xf32, #tpu.memory_space<vmem>>, vector<1x8x128xf32>
      tpu.vector_store %arg4[%c0_24, %c0_25, %c0_26], %43 {strides = array<i32>} : memref<1x8x128xf32, #tpu.memory_space<vmem>>, vector<1x8x128xf32>,
      %cst_27 = arith.constant 0.000000e+00 : f32
      %45 = vector.broadcast %cst_27 : f32 to vector<1x8x128xf32>
      %c0_28 = arith.constant 0 : index
      %c0_29 = arith.constant 0 : index
      %c0_30 = arith.constant 0 : index
      %46 = vector.load %arg5[%c0_28, %c0_29, %c0_30] : memref<1x8x128xf32, #tpu.memory_space<vmem>>, vector<1x8x128xf32>
      tpu.vector_store %arg5[%c0_28, %c0_29, %c0_30], %45 {strides = array<i32>} : memref<1x8x128xf32, #tpu.memory_space<vmem>>, vector<1x8x128xf32>,
    } else {
    }
    %c1_i32 = arith.constant 1 : i32
    %3 = arith.muli %arg0, %c1_i32 : i32
    %4 = arith.addi %3, %arg1 : i32
    %c16_i32 = arith.constant 16 : i32
    %5 = arith.muli %4, %c16_i32 : i32
    %c16_i32_1 = arith.constant 16 : i32
    %6 = arith.subi %c16_i32_1, %5 : i32
    %c0_i32_2 = arith.constant 0 : i32
    %c16_i32_3 = arith.constant 16 : i32
    %7 = arith.maxsi %c0_i32_2, %6 : i32
    %8 = arith.minsi %c16_i32_3, %7 : i32
    %9 = tpu.iota {dimensions = array<i32: 0>} : vector<16x128xi32>
    %cst = arith.constant 0.000000e+00 : f32
    %10 = vector.broadcast %cst : f32 to vector<8x128xf32>
    %c0_i32_4 = arith.constant 0 : i32
    %c16_i32_5 = arith.constant 16 : i32
    %11 = arith.muli %c0_i32_4, %c16_i32_5 : i32
    %12 = tpu.assume_multiple %11, 8 : i32
    %13 = arith.index_cast %12 : i32 to index
    %c0 = arith.constant 0 : index
    %14 = vector.load %arg2[%13, %c0] : memref<16x128xf32, #tpu.memory_space<vmem>>, vector<16x128xf32>
    %15 = arith.index_cast %12 : i32 to index
    %c0_6 = arith.constant 0 : index
    %16 = vector.load %arg3[%15, %c0_6] : memref<16x128xf32, #tpu.memory_space<vmem>>, vector<16x128xf32>
    %17 = arith.subi %8, %12 : i32
    %18 = vector.broadcast %17 : i32 to vector<16x128xi32>
    %19 = arith.cmpi slt, %9, %18 : vector<16x128xi32>
    %20 = arith.subf %14, %16 : vector<16x128xf32>
    %cst_7 = arith.constant 0.000000e+00 : f32
    %21 = vector.broadcast %cst_7 : f32 to vector<16x128xf32>
    %22 = arith.select %19, %20, %21 : vector<16x128xi1>, vector<16x128xf32>
    %23 = arith.mulf %22, %22 : vector<16x128xf32>
    %24 = vector.shape_cast %23 : vector<16x128xf32> to vector<2x8x128xf32>
    %cst_8 = arith.constant dense<0.000000e+00> : vector<8x128xf32>
    %25 = vector.multi_reduction <add>, %24, %cst_8 [0] : vector<2x8x128xf32> to vector<8x128xf32>
    %26 = arith.addf %10, %25 : vector<8x128xf32>
    %27 = math.absf %22 : vector<16x128xf32>
    %28 = vector.shape_cast %27 : vector<16x128xf32> to vector<2x8x128xf32>
    %cst_9 = arith.constant dense<0.000000e+00> : vector<8x128xf32>
    %29 = vector.multi_reduction <add>, %28, %cst_9 [0] : vector<2x8x128xf32> to vector<8x128xf32>
    %30 = arith.addf %10, %29 : vector<8x128xf32>
    %c1_i32_10 = arith.constant 1 : i32
    %c0_11 = arith.constant 0 : index
    %c0_12 = arith.constant 0 : index
    %c0_13 = arith.constant 0 : index
    %31 = vector.load %arg4[%c0_11, %c0_12, %c0_13] : memref<1x8x128xf32, #tpu.memory_space<vmem>>, vector<1x8x128xf32>
    %32 = vector.shape_cast %31 : vector<1x8x128xf32> to vector<8x128xf32>
    %33 = arith.addf %32, %26 : vector<8x128xf32>
    %c0_14 = arith.constant 0 : index
    %c0_15 = arith.constant 0 : index
    %c0_16 = arith.constant 0 : index
    %34 = vector.load %arg4[%c0_14, %c0_15, %c0_16] : memref<1x8x128xf32, #tpu.memory_space<vmem>>, vector<1x8x128xf32>
    %35 = vector.shape_cast %34 : vector<1x8x128xf32> to vector<8x128xf32>
    %36 = vector.shape_cast %33 : vector<8x128xf32> to vector<1x8x128xf32>
    tpu.vector_store %arg4[%c0_14, %c0_15, %c0_16], %36 {strides = array<i32>} : memref<1x8x128xf32, #tpu.memory_space<vmem>>, vector<1x8x128xf32>,
    %c0_17 = arith.constant 0 : index
    %c0_18 = arith.constant 0 : index
    %c0_19 = arith.constant 0 : index
    %37 = vector.load %arg5[%c0_17, %c0_18, %c0_19] : memref<1x8x128xf32, #tpu.memory_space<vmem>>, vector<1x8x128xf32>
    %38 = vector.shape_cast %37 : vector<1x8x128xf32> to vector<8x128xf32>
    %39 = arith.addf %38, %30 : vector<8x128xf32>
    %c0_20 = arith.constant 0 : index
    %c0_21 = arith.constant 0 : index
    %c0_22 = arith.constant 0 : index
    %40 = vector.load %arg5[%c0_20, %c0_21, %c0_22] : memref<1x8x128xf32, #tpu.memory_space<vmem>>, vector<1x8x128xf32>
    %41 = vector.shape_cast %40 : vector<1x8x128xf32> to vector<8x128xf32>
    %42 = vector.shape_cast %39 : vector<8x128xf32> to vector<1x8x128xf32>
    tpu.vector_store %arg5[%c0_20, %c0_21, %c0_22], %42 {strides = array<i32>} : memref<1x8x128xf32, #tpu.memory_space<vmem>>, vector<1x8x128xf32>,
    return
  }
  func.func @transform_0(%arg0: i32, %arg1: i32) -> (i32, i32) {
    %c1_i32 = arith.constant 1 : i32
    %0 = arith.muli %arg0, %c1_i32 : i32
    %1 = arith.addi %0, %arg1 : i32
    %c0_i32 = arith.constant 0 : i32
    %2 = arith.minsi %1, %c0_i32 : i32
    %c0_i32_0 = arith.constant 0 : i32
    %c0_i32_1 = arith.constant 0 : i32
    return %2, %c0_i32_0 : i32, i32
  }
  func.func @transform_1(%arg0: i32, %arg1: i32) -> (i32, i32) {
    %c1_i32 = arith.constant 1 : i32
    %0 = arith.muli %arg0, %c1_i32 : i32
    %1 = arith.addi %0, %arg1 : i32
    %c0_i32 = arith.constant 0 : i32
    %2 = arith.minsi %1, %c0_i32 : i32
    %c0_i32_0 = arith.constant 0 : i32
    %c0_i32_1 = arith.constant 0 : i32
    return %2, %c0_i32_0 : i32, i32
  }
  func.func @transform_2(%arg0: i32, %arg1: i32) -> (i32, i32, i32) {
    %c0_i32 = arith.constant 0 : i32
    %c0_i32_0 = arith.constant 0 : i32
    %c0_i32_1 = arith.constant 0 : i32
    return %arg0, %c0_i32, %c0_i32_0 : i32, i32, i32
  }
  func.func @transform_3(%arg0: i32, %arg1: i32) -> (i32, i32, i32) {
    %c0_i32 = arith.constant 0 : i32
    %c0_i32_0 = arith.constant 0 : i32
    %c0_i32_1 = arith.constant 0 : i32
    return %arg0, %c0_i32, %c0_i32_0 : i32, i32, i32
  }
}

</mosaic_0001>

<bundles_post_ra>
// kernel: tpu_custom_call.1
= control target key start
LH: loop header
LB: loop body
LE: loop exit
PB: predicated region body
PF: predicated region fallthrough
CT: control target
= control target key end

     0   :  { %9 = vsyncpa [#allocation3], 0  ;;  %s296_s0 = inlined_call_operand.hbm [shape: f32[16,128], index: 0, kind: input, shape index: {}]   ;;  %s297_s1 = inlined_call_operand.hbm [shape: f32[16,128], index: 1, kind: input, shape index: {}]   ;;  %s298_s2 = inlined_call_operand.hbm [shape: f32[1,8,128], index: 2, kind: output, shape index: {0}]   ;;  %s299_s3 = inlined_call_operand.hbm [shape: f32[1,8,128], index: 3, kind: output, shape index: {1}]  }
   0x1   :  { %10 = vsyncpa [#allocation6], 0 }
   0x2   :  { %11 = vsyncpa [#allocation4], 0 }
   0x3   :  { %12 = vsyncpa [#allocation9], 0  ;;  %s23_s14 = sshll.u32 %s296_s0, 4  ;;  %s258_s15 = smov [#allocation2]   ;;  %s24_s14 = int_to_ptr.hbm [resolvable:$true] %s23_s14 }
   0x4   :  { %s25_s16 = sshll.u32 %s258_s15, 4  ;;  %s42_s19 = sshll.u32 %s297_s1, 4  ;;  %s26_s16 = int_to_ptr.vmem [resolvable:$true] %s25_s16  ;;  %s43_s19 = int_to_ptr.hbm [resolvable:$true] %s42_s19 }
   0x5   :  { %s259_s20 = smov 128   ;;  %s260_s21 = smov 8  }
   0x6   :  { %31 = dma.hbm_to_vmem [thread:$0]  %s24_s14, 256, %s26_s16, [#allocation3], %s259_s20, %s259_s20, %s260_s21  }
   0x7   :  { %s261_s22 = smov [#allocation5]  }
   0x8   :  { %s44_s23 = sshll.u32 %s261_s22, 4  ;;  %s45_s23 = int_to_ptr.vmem [resolvable:$true] %s44_s23 }
   0x9   :  { %50 = dma.hbm_to_vmem [thread:$0]  %s43_s19, 256, %s45_s23, [#allocation6], %s259_s20, %s259_s20, %s260_s21  }
   0xa   :  { %250 = dma.done.wait [#allocation3], 256  }
   0xb   :  { %251 = vsyncadd [#allocation3], 4294967040 }
   0xc   :  { %252 = dma.done.wait [#allocation6], 256  }
   0xd   :  { %253 = vsyncadd [#allocation6], 4294967040  ;;  %v83_v0 = vld [vmem:[#allocation2] sm:$0xff]  ;;  %v84_v1 = vld [vmem:[#allocation2 + $0x8] sm:$0xff]  ;;  %s262_s0 = smov [#allocation7]   ;;  %s116_s26 = sshll.u32 %s298_s2, 4  ;;  %s117_s26 = int_to_ptr.hbm [resolvable:$true] %s116_s26 }
   0xe   :  { %v85_v2 = vld [vmem:[#allocation5] sm:$0xff]  ;;  %v86_v3 = vld [vmem:[#allocation5 + $0x8] sm:$0xff]  ;;  %s114_s1 = sshll.u32 %s262_s0, 4  ;;  %s263_s27 = smov [#allocation8]   ;;  %s115_s1 = int_to_ptr.vmem [resolvable:$true] %s114_s1 }
   0xf   :  { %v91_v4 = vsub.f32 %v83_v0, %v85_v2  ;;  %v92_v5 = vsub.f32 %v84_v1, %v86_v3  ;;  %s125_s28 = sshll.u32 %s263_s27, 4  ;;  %s127_s4 = sshll.u32 %s299_s3, 4  ;;  %s126_s28 = int_to_ptr.vmem [resolvable:$true] %s125_s28  ;;  %s128_s4 = int_to_ptr.hbm [resolvable:$true] %s127_s4 }
  0x11   :  { %v95_v6 = vmul.f32 %v91_v4, %v91_v4  ;;  %v99_v7 = vand.u32 2147483647, %v91_v4  ;;  %v96_v8 = vmul.f32 %v92_v5, %v92_v5  ;;  %v100_v9 = vand.u32 2147483647, %v92_v5 }
  0x13   :  { %v97_v10 = vadd.f32 %v96_v8, %v95_v6  ;;  %v101_v11 = vadd.f32 %v100_v9, %v99_v7 }
  0x15   :  { %105 = vst [vmem:[#allocation7] sm:$0xff] %v97_v10 }
  0x16   :  { %108 = vst [vmem:[#allocation8] sm:$0xff] %v101_v11  ;;  %119 = dma.vmem_to_hbm [thread:$0]  %s115_s1, 128, %s117_s26, [#allocation4]  }
  0x17   :  { %130 = dma.vmem_to_hbm [thread:$0]  %s126_s28, 128, %s128_s4, [#allocation9]  }
  0x18   :  { %254 = dma.done.wait [#allocation4], 128  }
  0x19   :  { %255 = vsyncadd [#allocation4], 4294967168 }
  0x1a   :  { %256 = dma.done.wait [#allocation9], 128  }
  0x1b   :  { %257 = vsyncadd [#allocation9], 4294967168 }
  0x1c   :  { %139 = vsyncpa [#allocation3], 1 }
  0x1d   :  { %140 = vsyncpa [#allocation6], 1 }
  0x1e   :  { %141 = vsyncpa [#allocation4], 1 }
  0x1f   :  { %142 = vsyncpa [#allocation9], 1 }

</bundles_post_ra>
